<compile_context>
chip_gen: v6e
topology: v6e:2x2x1
jax: 0.10.0
libtpu: 0.0.40
codegen_flags: <defaults>
</compile_context>

<pallas_src>
import functools

import jax
import jax.numpy as jnp
from jax.experimental import pallas as pl
from jax.experimental.pallas import tpu as pltpu


def _round_up(x, m):
    return (x + m - 1) // m * m


# ----------------------------------------------------------------------------
# Pallas kernel: fused conv (shifted-tap matmuls) + batchnorm + ReLU
# ----------------------------------------------------------------------------
def _cnn_block_kernel(w_ref, x_ref, mask_ref, gamma_ref, beta_ref, out_ref,
                      *, kh, kw, wp, use_bn, eps, inv_count):
    """One output-channel tile.

    w_ref    : [KH*KW, OC_T, Cp]   bf16   per-tap weight matrices
    x_ref    : [Cp, L_in]          bf16   channel-major flattened padded input
                                          (N*Hp*Wp valid columns + halo/pad)
    mask_ref : [1, L_out]          f32    1.0 on columns that are real conv
                                          outputs (used for BN statistics)
    gamma/beta: [OC_T, 1]          f32
    out_ref  : [OC_T, L_out]       f32
    """
    oc_t, l_out = out_ref.shape

    # Conv as KH*KW accumulated MXU matmuls over shifted lane windows.
    acc = jnp.zeros((oc_t, l_out), jnp.float32)
    for i in range(kh):
        for j in range(kw):
            d = i * wp + j                      # static flat shift of tap (i, j)
            w_tap = w_ref[i * kw + j]           # [OC_T, Cp]   (bf16)
            x_tap = x_ref[:, d:d + l_out]       # [Cp, L_out]  (bf16, shifted view)
            acc = acc + jnp.dot(w_tap, x_tap,
                                preferred_element_type=jnp.float32)

    if use_bn:
        # Per-output-channel batch statistics over all valid (N, OH, OW)
        # positions of this OC-row tile -- single pass (sum / sum of squares),
        # lane reduction on the XLU.  Invalid compute columns are masked out.
        msk = mask_ref[...]                     # [1, L_out] broadcasts over rows
        ym = acc * msk
        s1 = jnp.sum(ym, axis=1, keepdims=True)
        s2 = jnp.sum(ym * ym, axis=1, keepdims=True)
        mean = s1 * inv_count
        var = jnp.maximum(s2 * inv_count - mean * mean, 0.0)
        acc = (acc - mean) * jax.lax.rsqrt(var + eps)
        acc = acc * gamma_ref[...] + beta_ref[...]

    out_ref[...] = jnp.maximum(acc, 0.0).astype(out_ref.dtype)


# ----------------------------------------------------------------------------
# Wrapper: CNNBlock forward (NCHW in / NCHW out, like the PyTorch module)
# ----------------------------------------------------------------------------
def cnn_block_forward(x, weight, gamma, beta, *, stride=1, padding=0,
                      norm=None, eps=1e-5):
    """x: [N, C, H, W] float32.  weight: [OC, C, KH, KW] (Conv2d, bias=False)."""
    n, c, h, w = x.shape
    oc, c_w, kh, kw = weight.shape
    assert c_w == c, "weight/input channel mismatch"

    hp, wp = h + 2 * padding, w + 2 * padding
    oh = (hp - kh) // stride + 1
    ow = (wp - kw) // stride + 1

    # --- layout / padding choices (all host ops are O(input) bytes) ---------
    cp = _round_up(c, 16)                       # contraction dim (bf16 sublanes)
    oc_t = min(_round_up(oc, 8), 128)           # OC tile (sublane multiple)
    ocp = _round_up(oc, oc_t)

    l_valid = n * hp * wp                       # real compute columns
    l_out = _round_up(l_valid, 128)             # lane-dense output width
    d_max = (kh - 1) * wp + (kw - 1)            # largest tap shift
    l_in = _round_up(l_out + d_max, 128)        # input slab incl. halo

    # Padded input, channel-major, spatial+batch flattened onto the lane axis.
    xpad = jnp.pad(x, ((0, 0), (0, 0), (padding, padding), (padding, padding)))
    xflat = xpad.transpose(1, 0, 2, 3).reshape(c, l_valid)
    xflat = jnp.pad(xflat, ((0, cp - c), (0, l_in - l_valid)))
    xflat = xflat.astype(jnp.bfloat16)

    # Per-tap weight matrices: [KH*KW, OCp, Cp].
    w_taps = weight.transpose(2, 3, 0, 1).reshape(kh * kw, oc, c)
    w_taps = jnp.pad(w_taps, ((0, 0), (0, ocp - oc), (0, cp - c)))
    w_taps = w_taps.astype(jnp.bfloat16)

    gamma2 = jnp.pad(gamma.astype(jnp.float32).reshape(oc, 1),
                     ((0, ocp - oc), (0, 0)), constant_values=1.0)
    beta2 = jnp.pad(beta.astype(jnp.float32).reshape(oc, 1),
                    ((0, ocp - oc), (0, 0)))

    # BN validity mask over the flattened compute grid (also encodes stride).
    idx = jnp.arange(l_out)
    rem = idx % (hp * wp)
    r = rem // wp
    q = rem % wp
    valid = ((idx < l_valid)
             & (r % stride == 0) & (r // stride < oh)
             & (q % stride == 0) & (q // stride < ow))
    mask = valid.astype(jnp.float32).reshape(1, l_out)
    inv_count = 1.0 / float(n * oh * ow)

    kernel = functools.partial(
        _cnn_block_kernel, kh=kh, kw=kw, wp=wp,
        use_bn=(norm == "batch"), eps=float(eps), inv_count=inv_count)

    grid = (ocp // oc_t,)
    y = pl.pallas_call(
        kernel,
        out_shape=jax.ShapeDtypeStruct((ocp, l_out), jnp.float32),
        grid_spec=pltpu.PrefetchScalarGridSpec(
            num_scalar_prefetch=0,
            grid=grid,
            in_specs=[
                pl.BlockSpec((kh * kw, oc_t, cp), lambda i: (0, i, 0)),
                pl.BlockSpec((cp, l_in), lambda i: (0, 0)),   # resident slab
                pl.BlockSpec((1, l_out), lambda i: (0, 0)),
                pl.BlockSpec((oc_t, 1), lambda i: (i, 0)),
                pl.BlockSpec((oc_t, 1), lambda i: (i, 0)),
            ],
            out_specs=pl.BlockSpec((oc_t, l_out), lambda i: (i, 0)),
        ),
        compiler_params=pltpu.CompilerParams(
            dimension_semantics=("parallel",),       # shard OC tiles on v7x 2 TCs
            vmem_limit_bytes=64 * 1024 * 1024,
        ),
    )(w_taps, xflat, mask, gamma2, beta2)

    # [OCp, L_out] -> valid stride-1 grid -> strided output -> NCHW.
    y = y[:oc, :l_valid].reshape(oc, n, hp, wp)
    y = y[:, :, ::stride, ::stride][:, :, :oh, :ow]
    return y.transpose(1, 0, 2, 3)


# ----------------------------------------------------------------------------
# Pure-JAX reference (same bf16 input rounding, f32 accumulation)
# ----------------------------------------------------------------------------
def _reference(x, weight, gamma, beta, *, stride, padding, norm, eps=1e-5):
    xr = x.astype(jnp.bfloat16).astype(jnp.float32)
    wr = weight.astype(jnp.bfloat16).astype(jnp.float32)
    y = jax.lax.conv_general_dilated(
        xr, wr, window_strides=(stride, stride),
        padding=[(padding, padding), (padding, padding)],
        dimension_numbers=("NCHW", "OIHW", "NCHW"))
    if norm == "batch":
        mean = jnp.mean(y, axis=(0, 2, 3), keepdims=True)
        var = jnp.mean((y - mean) ** 2, axis=(0, 2, 3), keepdims=True)
        y = (y - mean) * jax.lax.rsqrt(var + eps)
        y = y * gamma.reshape(1, -1, 1, 1) + beta.reshape(1, -1, 1, 1)
    return jnp.maximum(y, 0.0)


if __name__ == "__main__":
    N, C, H, W = 2, 4, 16, 16
    OC, KH, KW = 8, 3, 3

    key = jax.random.PRNGKey(0)
    kx, kw_ = jax.random.split(key)
    x = jax.random.normal(kx, (N, C, H, W), dtype=jnp.float32)
    weight = jax.random.normal(kw_, (OC, C, KH, KW), dtype=jnp.float32) * 0.1
    gamma = jnp.ones((OC,), dtype=jnp.float32)     # BatchNorm2d default affine
    beta = jnp.zeros((OC,), dtype=jnp.float32)

    configs = [
        dict(stride=1, padding=1, norm="batch"),   # conv + BN + ReLU
        dict(stride=2, padding=1, norm=None),      # conv + ReLU, strided
    ]
    for cfg in configs:
        out = cnn_block_forward(x, weight, gamma, beta, **cfg)
        out = jax.block_until_ready(out)
        ref = _reference(x, weight, gamma, beta, **cfg)
        assert out.shape == ref.shape, (out.shape, ref.shape)
        assert jnp.allclose(out, ref, atol=2e-3, rtol=2e-3), \
            f"mismatch vs reference for {cfg}"

    print("KERNEL_OK")
</pallas_src>

<mosaic_0001>
module attributes {stable_mosaic.version = 11 : i64} {
  func.func @_cnn_block_kernel(%arg0: i32, %arg1: memref<9x8x16xbf16, #tpu.memory_space<vmem>>, %arg2: memref<16x896xbf16, #tpu.memory_space<vmem>>, %arg3: memref<1x768xf32, #tpu.memory_space<vmem>>, %arg4: memref<8x1xf32, #tpu.memory_space<vmem>>, %arg5: memref<8x1xf32, #tpu.memory_space<vmem>>, %arg6: memref<8x768xf32, #tpu.memory_space<vmem>>) attributes {dimension_semantics = [#tpu.dimension_semantics<parallel>], iteration_bounds = array<i64: 1>, scalar_prefetch = 0 : i64, scratch_operands = 0 : i64, tpu.core_type = #tpu.core_type<tc>, window_params = [{transform_indices = @transform_0, window_bounds = array<i64: 9, 8, 16>}, {pipeline_mode = #tpu.pipeline_mode<synchronous>, transform_indices = @transform_1, window_bounds = array<i64: 16, 896>}, {pipeline_mode = #tpu.pipeline_mode<synchronous>, transform_indices = @transform_2, window_bounds = array<i64: 1, 768>}, {transform_indices = @transform_3, window_bounds = array<i64: 8, 1>}, {transform_indices = @transform_4, window_bounds = array<i64: 8, 1>}, {transform_indices = @transform_5, window_bounds = array<i64: 8, 768>}]} {
    %cst = arith.constant 0.000000e+00 : f32
    %0 = vector.broadcast %cst : f32 to vector<8x768xf32>
    %c0 = arith.constant 0 : index
    %c0_0 = arith.constant 0 : index
    %c0_1 = arith.constant 0 : index
    %1 = vector.load %arg1[%c0, %c0_0, %c0_1] : memref<9x8x16xbf16, #tpu.memory_space<vmem>>, vector<1x8x16xbf16>
    %2 = vector.shape_cast %1 : vector<1x8x16xbf16> to vector<8x16xbf16>
    %c0_2 = arith.constant 0 : index
    %c0_3 = arith.constant 0 : index
    %3 = vector.load %arg2[%c0_2, %c0_3] : memref<16x896xbf16, #tpu.memory_space<vmem>>, vector<16x768xbf16>
    %cst_4 = arith.constant dense<0.000000e+00> : vector<8x768xf32>
    %4 = tpu.matmul %2, %3, %cst_4 {dimension_numbers = #tpu.dot_dimension_numbers<[1], [0], [0], [1], [0, 0, 1, 1], [], []>} : vector<8x16xbf16>, vector<16x768xbf16>, vector<8x768xf32> -> vector<8x768xf32>
    %5 = arith.addf %0, %4 : vector<8x768xf32>
    %c1 = arith.constant 1 : index
    %c0_5 = arith.constant 0 : index
    %c0_6 = arith.constant 0 : index
    %6 = vector.load %arg1[%c1, %c0_5, %c0_6] : memref<9x8x16xbf16, #tpu.memory_space<vmem>>, vector<1x8x16xbf16>
    %7 = vector.shape_cast %6 : vector<1x8x16xbf16> to vector<8x16xbf16>
    %c0_7 = arith.constant 0 : index
    %c1_8 = arith.constant 1 : index
    %8 = vector.load %arg2[%c0_7, %c1_8] : memref<16x896xbf16, #tpu.memory_space<vmem>>, vector<16x768xbf16>
    %cst_9 = arith.constant dense<0.000000e+00> : vector<8x768xf32>
    %9 = tpu.matmul %7, %8, %cst_9 {dimension_numbers = #tpu.dot_dimension_numbers<[1], [0], [0], [1], [0, 0, 1, 1], [], []>} : vector<8x16xbf16>, vector<16x768xbf16>, vector<8x768xf32> -> vector<8x768xf32>
    %10 = arith.addf %5, %9 : vector<8x768xf32>
    %c2 = arith.constant 2 : index
    %c0_10 = arith.constant 0 : index
    %c0_11 = arith.constant 0 : index
    %11 = vector.load %arg1[%c2, %c0_10, %c0_11] : memref<9x8x16xbf16, #tpu.memory_space<vmem>>, vector<1x8x16xbf16>
    %12 = vector.shape_cast %11 : vector<1x8x16xbf16> to vector<8x16xbf16>
    %c0_12 = arith.constant 0 : index
    %c2_13 = arith.constant 2 : index
    %13 = vector.load %arg2[%c0_12, %c2_13] : memref<16x896xbf16, #tpu.memory_space<vmem>>, vector<16x768xbf16>
    %cst_14 = arith.constant dense<0.000000e+00> : vector<8x768xf32>
    %14 = tpu.matmul %12, %13, %cst_14 {dimension_numbers = #tpu.dot_dimension_numbers<[1], [0], [0], [1], [0, 0, 1, 1], [], []>} : vector<8x16xbf16>, vector<16x768xbf16>, vector<8x768xf32> -> vector<8x768xf32>
    %15 = arith.addf %10, %14 : vector<8x768xf32>
    %c3 = arith.constant 3 : index
    %c0_15 = arith.constant 0 : index
    %c0_16 = arith.constant 0 : index
    %16 = vector.load %arg1[%c3, %c0_15, %c0_16] : memref<9x8x16xbf16, #tpu.memory_space<vmem>>, vector<1x8x16xbf16>
    %17 = vector.shape_cast %16 : vector<1x8x16xbf16> to vector<8x16xbf16>
    %c0_17 = arith.constant 0 : index
    %c18 = arith.constant 18 : index
    %18 = vector.load %arg2[%c0_17, %c18] : memref<16x896xbf16, #tpu.memory_space<vmem>>, vector<16x768xbf16>
    %cst_18 = arith.constant dense<0.000000e+00> : vector<8x768xf32>
    %19 = tpu.matmul %17, %18, %cst_18 {dimension_numbers = #tpu.dot_dimension_numbers<[1], [0], [0], [1], [0, 0, 1, 1], [], []>} : vector<8x16xbf16>, vector<16x768xbf16>, vector<8x768xf32> -> vector<8x768xf32>
    %20 = arith.addf %15, %19 : vector<8x768xf32>
    %c4 = arith.constant 4 : index
    %c0_19 = arith.constant 0 : index
    %c0_20 = arith.constant 0 : index
    %21 = vector.load %arg1[%c4, %c0_19, %c0_20] : memref<9x8x16xbf16, #tpu.memory_space<vmem>>, vector<1x8x16xbf16>
    %22 = vector.shape_cast %21 : vector<1x8x16xbf16> to vector<8x16xbf16>
    %c0_21 = arith.constant 0 : index
    %c19 = arith.constant 19 : index
    %23 = vector.load %arg2[%c0_21, %c19] : memref<16x896xbf16, #tpu.memory_space<vmem>>, vector<16x768xbf16>
    %cst_22 = arith.constant dense<0.000000e+00> : vector<8x768xf32>
    %24 = tpu.matmul %22, %23, %cst_22 {dimension_numbers = #tpu.dot_dimension_numbers<[1], [0], [0], [1], [0, 0, 1, 1], [], []>} : vector<8x16xbf16>, vector<16x768xbf16>, vector<8x768xf32> -> vector<8x768xf32>
    %25 = arith.addf %20, %24 : vector<8x768xf32>
    %c5 = arith.constant 5 : index
    %c0_23 = arith.constant 0 : index
    %c0_24 = arith.constant 0 : index
    %26 = vector.load %arg1[%c5, %c0_23, %c0_24] : memref<9x8x16xbf16, #tpu.memory_space<vmem>>, vector<1x8x16xbf16>
    %27 = vector.shape_cast %26 : vector<1x8x16xbf16> to vector<8x16xbf16>
    %c0_25 = arith.constant 0 : index
    %c20 = arith.constant 20 : index
    %28 = vector.load %arg2[%c0_25, %c20] : memref<16x896xbf16, #tpu.memory_space<vmem>>, vector<16x768xbf16>
    %cst_26 = arith.constant dense<0.000000e+00> : vector<8x768xf32>
    %29 = tpu.matmul %27, %28, %cst_26 {dimension_numbers = #tpu.dot_dimension_numbers<[1], [0], [0], [1], [0, 0, 1, 1], [], []>} : vector<8x16xbf16>, vector<16x768xbf16>, vector<8x768xf32> -> vector<8x768xf32>
    %30 = arith.addf %25, %29 : vector<8x768xf32>
    %c6 = arith.constant 6 : index
    %c0_27 = arith.constant 0 : index
    %c0_28 = arith.constant 0 : index
    %31 = vector.load %arg1[%c6, %c0_27, %c0_28] : memref<9x8x16xbf16, #tpu.memory_space<vmem>>, vector<1x8x16xbf16>
    %32 = vector.shape_cast %31 : vector<1x8x16xbf16> to vector<8x16xbf16>
    %c0_29 = arith.constant 0 : index
    %c36 = arith.constant 36 : index
    %33 = vector.load %arg2[%c0_29, %c36] : memref<16x896xbf16, #tpu.memory_space<vmem>>, vector<16x768xbf16>
    %cst_30 = arith.constant dense<0.000000e+00> : vector<8x768xf32>
    %34 = tpu.matmul %32, %33, %cst_30 {dimension_numbers = #tpu.dot_dimension_numbers<[1], [0], [0], [1], [0, 0, 1, 1], [], []>} : vector<8x16xbf16>, vector<16x768xbf16>, vector<8x768xf32> -> vector<8x768xf32>
    %35 = arith.addf %30, %34 : vector<8x768xf32>
    %c7 = arith.constant 7 : index
    %c0_31 = arith.constant 0 : index
    %c0_32 = arith.constant 0 : index
    %36 = vector.load %arg1[%c7, %c0_31, %c0_32] : memref<9x8x16xbf16, #tpu.memory_space<vmem>>, vector<1x8x16xbf16>
    %37 = vector.shape_cast %36 : vector<1x8x16xbf16> to vector<8x16xbf16>
    %c0_33 = arith.constant 0 : index
    %c37 = arith.constant 37 : index
    %38 = vector.load %arg2[%c0_33, %c37] : memref<16x896xbf16, #tpu.memory_space<vmem>>, vector<16x768xbf16>
    %cst_34 = arith.constant dense<0.000000e+00> : vector<8x768xf32>
    %39 = tpu.matmul %37, %38, %cst_34 {dimension_numbers = #tpu.dot_dimension_numbers<[1], [0], [0], [1], [0, 0, 1, 1], [], []>} : vector<8x16xbf16>, vector<16x768xbf16>, vector<8x768xf32> -> vector<8x768xf32>
    %40 = arith.addf %35, %39 : vector<8x768xf32>
    %c8 = arith.constant 8 : index
    %c0_35 = arith.constant 0 : index
    %c0_36 = arith.constant 0 : index
    %41 = vector.load %arg1[%c8, %c0_35, %c0_36] : memref<9x8x16xbf16, #tpu.memory_space<vmem>>, vector<1x8x16xbf16>
    %42 = vector.shape_cast %41 : vector<1x8x16xbf16> to vector<8x16xbf16>
    %c0_37 = arith.constant 0 : index
    %c38 = arith.constant 38 : index
    %43 = vector.load %arg2[%c0_37, %c38] : memref<16x896xbf16, #tpu.memory_space<vmem>>, vector<16x768xbf16>
    %cst_38 = arith.constant dense<0.000000e+00> : vector<8x768xf32>
    %44 = tpu.matmul %42, %43, %cst_38 {dimension_numbers = #tpu.dot_dimension_numbers<[1], [0], [0], [1], [0, 0, 1, 1], [], []>} : vector<8x16xbf16>, vector<16x768xbf16>, vector<8x768xf32> -> vector<8x768xf32>
    %45 = arith.addf %40, %44 : vector<8x768xf32>
    %c0_39 = arith.constant 0 : index
    %c0_40 = arith.constant 0 : index
    %46 = vector.load %arg3[%c0_39, %c0_40] : memref<1x768xf32, #tpu.memory_space<vmem>>, vector<1x768xf32>
    %47 = vector.broadcast %46 : vector<1x768xf32> to vector<8x768xf32>
    %48 = arith.mulf %45, %47 : vector<8x768xf32>
    %cst_41 = arith.constant dense<0.000000e+00> : vector<8xf32>
    %49 = vector.multi_reduction <add>, %48, %cst_41 [1] : vector<8x768xf32> to vector<8xf32>
    %50 = vector.shape_cast %49 : vector<8xf32> to vector<8x1xf32>
    %51 = arith.mulf %48, %48 : vector<8x768xf32>
    %cst_42 = arith.constant dense<0.000000e+00> : vector<8xf32>
    %52 = vector.multi_reduction <add>, %51, %cst_42 [1] : vector<8x768xf32> to vector<8xf32>
    %53 = vector.shape_cast %52 : vector<8xf32> to vector<8x1xf32>
    %cst_43 = arith.constant 0.001953125 : f32
    %54 = vector.broadcast %cst_43 : f32 to vector<8x1xf32>
    %55 = arith.mulf %50, %54 : vector<8x1xf32>
    %cst_44 = arith.constant 0.001953125 : f32
    %56 = vector.broadcast %cst_44 : f32 to vector<8x1xf32>
    %57 = arith.mulf %53, %56 : vector<8x1xf32>
    %58 = arith.mulf %55, %55 : vector<8x1xf32>
    %59 = arith.subf %57, %58 : vector<8x1xf32>
    %cst_45 = arith.constant 0.000000e+00 : f32
    %60 = vector.broadcast %cst_45 : f32 to vector<8x1xf32>
    %61 = arith.maximumf %59, %60 : vector<8x1xf32>
    %62 = vector.broadcast %55 : vector<8x1xf32> to vector<8x768xf32>
    %63 = arith.subf %45, %62 : vector<8x768xf32>
    %cst_46 = arith.constant 9.99999974E-6 : f32
    %64 = vector.broadcast %cst_46 : f32 to vector<8x1xf32>
    %65 = arith.addf %61, %64 : vector<8x1xf32>
    %66 = math.rsqrt %65 : vector<8x1xf32>
    %67 = vector.broadcast %66 : vector<8x1xf32> to vector<8x768xf32>
    %68 = arith.mulf %63, %67 : vector<8x768xf32>
    %c0_47 = arith.constant 0 : index
    %c0_48 = arith.constant 0 : index
    %69 = vector.load %arg4[%c0_47, %c0_48] : memref<8x1xf32, #tpu.memory_space<vmem>>, vector<8x1xf32>
    %70 = vector.broadcast %69 : vector<8x1xf32> to vector<8x768xf32>
    %71 = arith.mulf %68, %70 : vector<8x768xf32>
    %c0_49 = arith.constant 0 : index
    %c0_50 = arith.constant 0 : index
    %72 = vector.load %arg5[%c0_49, %c0_50] : memref<8x1xf32, #tpu.memory_space<vmem>>, vector<8x1xf32>
    %73 = vector.broadcast %72 : vector<8x1xf32> to vector<8x768xf32>
    %74 = arith.addf %71, %73 : vector<8x768xf32>
    %cst_51 = arith.constant 0.000000e+00 : f32
    %75 = vector.broadcast %cst_51 : f32 to vector<8x768xf32>
    %76 = arith.maximumf %74, %75 : vector<8x768xf32>
    %c0_52 = arith.constant 0 : index
    %c0_53 = arith.constant 0 : index
    %77 = vector.load %arg6[%c0_52, %c0_53] : memref<8x768xf32, #tpu.memory_space<vmem>>, vector<8x768xf32>
    tpu.vector_store %arg6[%c0_52, %c0_53], %76 {strides = array<i32>} : memref<8x768xf32, #tpu.memory_space<vmem>>, vector<8x768xf32>,
    return
  }
  func.func @transform_0(%arg0: i32) -> (i32, i32, i32) {
    %c0_i32 = arith.constant 0 : i32
    %c0_i32_0 = arith.constant 0 : i32
    %c0_i32_1 = arith.constant 0 : i32
    return %c0_i32, %arg0, %c0_i32_0 : i32, i32, i32
  }
  func.func @transform_1(%arg0: i32) -> (i32, i32) {
    %c0_i32 = arith.constant 0 : i32
    %c0_i32_0 = arith.constant 0 : i32
    %c0_i32_1 = arith.constant 0 : i32
    return %c0_i32, %c0_i32_0 : i32, i32
  }
  func.func @transform_2(%arg0: i32) -> (i32, i32) {
    %c0_i32 = arith.constant 0 : i32
    %c0_i32_0 = arith.constant 0 : i32
    %c0_i32_1 = arith.constant 0 : i32
    return %c0_i32, %c0_i32_0 : i32, i32
  }
  func.func @transform_3(%arg0: i32) -> (i32, i32) {
    %c0_i32 = arith.constant 0 : i32
    %c0_i32_0 = arith.constant 0 : i32
    return %arg0, %c0_i32 : i32, i32
  }
  func.func @transform_4(%arg0: i32) -> (i32, i32) {
    %c0_i32 = arith.constant 0 : i32
    %c0_i32_0 = arith.constant 0 : i32
    return %arg0, %c0_i32 : i32, i32
  }
  func.func @transform_5(%arg0: i32) -> (i32, i32) {
    %c0_i32 = arith.constant 0 : i32
    %c0_i32_0 = arith.constant 0 : i32
    return %arg0, %c0_i32 : i32, i32
  }
}

</mosaic_0001>

<bundles_post_ra>
// kernel: tpu_custom_call.1
= control target key start
LH: loop header
LB: loop body
LE: loop exit
PB: predicated region body
PF: predicated region fallthrough
CT: control target
= control target key end

     0   :  { %10 = vsyncpa [#allocation3], 0  ;;  %s2123_s0 = inlined_call_operand.hbm [shape: bf16[9,8,16], index: 0, kind: input, shape index: {}]   ;;  %s2124_s1 = inlined_call_operand.hbm [shape: bf16[16,896], index: 1, kind: input, shape index: {}]   ;;  %s2125_s2 = inlined_call_operand.vmem [shape: f32[1,768], index: 2, kind: input, shape index: {}]   ;;  %s2126_s3 = inlined_call_operand.vmem [shape: f32[8,1], index: 3, kind: input, shape index: {}]   ;;  %s2127_s4 = inlined_call_operand.vmem [shape: f32[8,1], index: 4, kind: input, shape index: {}]   ;;  %s2128_s5 = inlined_call_operand.hbm [shape: f32[8,768], index: 5, kind: output, shape index: {}]  }
   0x1   :  { %11 = vsyncpa [#allocation6], 0 }
   0x2   :  { %12 = vsyncpa [#allocation4], 0  ;;  %s1798_s18 = smov [#allocation2]  }
   0x3   :  { %s18_s19 = sshll.u32 %s1798_s18, 4  ;;  %s19_s19 = int_to_ptr.vmem [resolvable:$true] %s18_s19 }
   0x4   :  { %s1740_s20 = scalar_lea.vmem %s19_s19, 576  ;;  %p1745_p1 = scmp.lt.s32.totalorder %s19_s19, %s19_s19 }
   0x5   :  { %p1741_p0 = scmp.ne.s32.totalorder %s19_s19, %s1740_s20  ;;  %p1746_p2 = scmp.lt.s32.totalorder %s1740_s20, %s1740_s20 }
   0x7   :  { %p1747_p3 = por %p1746_p2, %p1745_p1 }
   0x9   :  { %p1748_p4 = pnand %p1747_p3, %p1741_p0 }
   0xb   :  { %1751 = shalt.err (!%p1748_p4)
}
   0xc   :  { %s1799_s21 = smov 64   ;;  %s1800_s22 = smov 4  }
   0xd   :  { %24 = dma.hbm_to_vmem [thread:$0]  %s2123_s0, 576, %s19_s19, [#allocation3], %s1799_s21, %s1799_s21, %s1800_s22  }
   0xe   :  { %s1801_s25 = smov [#allocation5]  }
   0xf   :  { %s30_s26 = sshll.u32 %s1801_s25, 4  ;;  %s31_s26 = int_to_ptr.vmem [resolvable:$true] %s30_s26 }
  0x10   :  { %s1760_s27 = scalar_lea.vmem %s31_s26, 896  ;;  %p1765_p6 = scmp.lt.s32.totalorder %s31_s26, %s31_s26 }
  0x11   :  { %p1761_p5 = scmp.ne.s32.totalorder %s31_s26, %s1760_s27  ;;  %p1766_p7 = scmp.lt.s32.totalorder %s1760_s27, %s1760_s27 }
  0x13   :  { %p1767_p8 = por %p1766_p7, %p1765_p6 }
  0x15   :  { %p1768_p9 = pnand %p1767_p8, %p1761_p5 }
  0x17   :  { %1771 = shalt.err (!%p1768_p9)
}
  0x18   :  { %s1802_s28 = smov 448   ;;  %s1803_s29 = smov 28  }
  0x19   :  { %36 = dma.hbm_to_vmem [thread:$0]  %s2124_s1, 896, %s31_s26, [#allocation6], %s1802_s28, %s1802_s28, %s1803_s29  }
  0x1a   :  { %1792 = dma.done.wait [#allocation3], 576  }
  0x1b   :  { %1793 = vsyncadd [#allocation3], 4294966720 }
  0x1c   :  { %1794 = dma.done.wait [#allocation6], 896  }
  0x1d   :  { %1795 = vsyncadd [#allocation6], 4294966400  ;;  %v1804_v0 = vmov 0   ;;  %v1854_v1 = vld [vmem:[#allocation5 + $0x4] ss:$28 sps:$4 sm:$0xff]   ;;  %s1805_s0 = smov 127  }
  0x1e   :  { %159 = vmatprep.mubr.bf16.mxu0 %v1804_v0  ;;  %200 = vmatprep.mubr.bf16.mxu1 %v1804_v0  ;;  %v1856_v2 = vld [vmem:[#allocation5] ss:$28 sps:$4 sm:$0xff]   ;;  %v1859_v3 = vld [vmem:[#allocation5 + $0x8] ss:$28 sps:$4 sm:$0xff]   ;;  %v1865_v5 = vld [vmem:[#allocation5 + $0x10] ss:$28 sps:$4 sm:$0xff]  }
  0x1f   :  { %1718 = vset.pattern.permute.xlu0 %v1804_v0  ;;  %1719 = vset.pattern.permute.xlu1 %v1804_v0  ;;  %v1862_v4 = vld [vmem:[#allocation5 + $0xc] ss:$28 sps:$4 sm:$0xff]   ;;  %v1868_v6 = vld [vmem:[#allocation5 + $0x14] ss:$28 sps:$4 sm:$0xff]   ;;  %s1806_s1 = smov 126   ;;  %s1807_s7 = smov 110  }
  0x20   :  { %98 = vrot.lane.b32.xlu0 %v1854_v1, %s1805_s0  ;;  %96 = vrot.lane.b32.xlu1 %v1856_v2, %s1805_s0  ;;  %v1729_v7 = vld [vmem:[#allocation5 + $0x18] ss:$28 sps:$4 sm:$0xff]   ;;  %s1808_s8 = smov 109   ;;  %s1809_s9 = smov 108   ;;  %vm110_vm0 = vcmask 1039360   ;;  %vm123_vm1 = vcmask 130048  }
  0x21   :  { %s1810_s10 = smov 92   ;;  %s1811_s11 = smov 91   ;;  %v58_v14 = vld [vmem:[#allocation2 + $0x4] sm:$0xf]  ;;  %vm422_vm2 = vcmask 1031168   ;;  %vm583_vm3 = vcmask 900096  }
  0x22   :  { %s1812_s12 = smov 90   ;;  %v50_v26 = vld [vmem:[#allocation2] sm:$0xf]  ;;  %v407_v38 = vld [vmem:[#allocation2 + $0x8] sm:$0xf]  ;;  %vm744_vm4 = vcmask 891904  }
  0x23   :  { %v568_v50 = vld [vmem:[#allocation2 + $0xc] sm:$0xf]  ;;  %v729_v63 = vld [vmem:[#allocation2 + $0x10] sm:$0xf]  ;;  %vm905_vm5 = vcmask 883712   ;;  %vm1066_vm6 = vcmask 752640  }
  0x24   :  { %100 = vrot.lane.b32.xlu0 %v1859_v3, %s1805_s0  ;;  %102 = vrot.lane.b32.xlu1 %v1862_v4, %s1805_s0  ;;  %vm1227_vm7 = vcmask 744448   ;;  %vm1388_vm8 = vcmask 736256  }
  0x28   :  { %104 = vrot.lane.b32.xlu0 %v1865_v5, %s1805_s0  ;;  %106 = vrot.lane.b32.xlu1 %v1868_v6, %s1805_s0 }
  0x2c   :  { %108 = vrot.lane.b32.xlu0 %v1729_v7, %s1805_s0  ;;  %410 = vrot.lane.b32.xlu1 %v1854_v1, %s1806_s1 }
  0x30   :  { %412 = vrot.lane.b32.xlu0 %v1859_v3, %s1806_s1  ;;  %408 = vrot.lane.b32.xlu1 %v1856_v2, %s1806_s1 }
  0x34   :  { %414 = vrot.lane.b32.xlu0 %v1862_v4, %s1806_s1  ;;  %416 = vrot.lane.b32.xlu1 %v1865_v5, %s1806_s1 }
  0x38   :  { %418 = vrot.lane.b32.xlu0 %v1868_v6, %s1806_s1  ;;  %420 = vrot.lane.b32.xlu1 %v1729_v7, %s1806_s1 }
  0x3c   :  { %571 = vrot.lane.b32.xlu0 %v1854_v1, %s1807_s7  ;;  %573 = vrot.lane.b32.xlu1 %v1859_v3, %s1807_s7 }
  0x40   :  { %569 = vrot.lane.b32.xlu0 %v1856_v2, %s1807_s7  ;;  %575 = vrot.lane.b32.xlu1 %v1862_v4, %s1807_s7 }
  0x44   :  { %577 = vrot.lane.b32.xlu0 %v1865_v5, %s1807_s7  ;;  %579 = vrot.lane.b32.xlu1 %v1868_v6, %s1807_s7 }
  0x48   :  { %581 = vrot.lane.b32.xlu0 %v1729_v7, %s1807_s7  ;;  %732 = vrot.lane.b32.xlu1 %v1854_v1, %s1808_s8 }
  0x4c   :  { %734 = vrot.lane.b32.xlu0 %v1859_v3, %s1808_s8  ;;  %730 = vrot.lane.b32.xlu1 %v1856_v2, %s1808_s8 }
  0x50   :  { %736 = vrot.lane.b32.xlu0 %v1862_v4, %s1808_s8  ;;  %738 = vrot.lane.b32.xlu1 %v1865_v5, %s1808_s8 }
  0x54   :  { %740 = vrot.lane.b32.xlu0 %v1868_v6, %s1808_s8  ;;  %742 = vrot.lane.b32.xlu1 %v1729_v7, %s1808_s8 }
  0x58   :  { %893 = vrot.lane.b32.xlu0 %v1854_v1, %s1809_s9  ;;  %895 = vrot.lane.b32.xlu1 %v1859_v3, %s1809_s9 }
  0x5c   :  { %891 = vrot.lane.b32.xlu0 %v1856_v2, %s1809_s9  ;;  %897 = vrot.lane.b32.xlu1 %v1862_v4, %s1809_s9 }
  0x60   :  { %899 = vrot.lane.b32.xlu0 %v1865_v5, %s1809_s9  ;;  %901 = vrot.lane.b32.xlu1 %v1868_v6, %s1809_s9 }
  0x64   :  { %903 = vrot.lane.b32.xlu0 %v1729_v7, %s1809_s9  ;;  %1054 = vrot.lane.b32.xlu1 %v1854_v1, %s1810_s10 }
  0x68   :  { %1056 = vrot.lane.b32.xlu0 %v1859_v3, %s1810_s10  ;;  %1052 = vrot.lane.b32.xlu1 %v1856_v2, %s1810_s10 }
  0x6c   :  { %1058 = vrot.lane.b32.xlu0 %v1862_v4, %s1810_s10  ;;  %1060 = vrot.lane.b32.xlu1 %v1865_v5, %s1810_s10 }
  0x70   :  { %1062 = vrot.lane.b32.xlu0 %v1868_v6, %s1810_s10  ;;  %1064 = vrot.lane.b32.xlu1 %v1729_v7, %s1810_s10 }
  0x74   :  { %1215 = vrot.lane.b32.xlu0 %v1854_v1, %s1811_s11  ;;  %1217 = vrot.lane.b32.xlu1 %v1859_v3, %s1811_s11 }
  0x78   :  { %1213 = vrot.lane.b32.xlu0 %v1856_v2, %s1811_s11  ;;  %1219 = vrot.lane.b32.xlu1 %v1862_v4, %s1811_s11 }
  0x7c   :  { %1221 = vrot.lane.b32.xlu0 %v1865_v5, %s1811_s11  ;;  %1223 = vrot.lane.b32.xlu1 %v1868_v6, %s1811_s11 }
  0x80   :  { %1225 = vrot.lane.b32.xlu0 %v1729_v7, %s1811_s11  ;;  %1376 = vrot.lane.b32.xlu1 %v1854_v1, %s1812_s12 }
  0x84   :  { %1378 = vrot.lane.b32.xlu0 %v1859_v3, %s1812_s12  ;;  %1374 = vrot.lane.b32.xlu1 %v1856_v2, %s1812_s12 }
  0x88   :  { %1380 = vrot.lane.b32.xlu0 %v1862_v4, %s1812_s12  ;;  %1382 = vrot.lane.b32.xlu1 %v1865_v5, %s1812_s12 }
  0x8c   :  { %1384 = vrot.lane.b32.xlu0 %v1868_v6, %s1812_s12  ;;  %1386 = vrot.lane.b32.xlu1 %v1729_v7, %s1812_s12 }
  0x92   :  { %v99_v8 = vpop.permute.xlu0 %98  ;;  %v97_v9 = vpop.permute.xlu1 %96 }
  0x93   :  { %v111_v13 = vsel %vm110_vm0, %v97_v9, %v99_v8 }
  0x96   :  { %v101_v10 = vpop.permute.xlu0 %100  ;;  %v103_v11 = vpop.permute.xlu1 %102 }
  0x97   :  { %v112_v12 = vsel %vm110_vm0, %v99_v8, %v101_v10  ;;  %v113_v18 = vsel %vm110_vm0, %v101_v10, %v103_v11 }
  0x98   :  { %141 = vmatprep.subr.bf16.mxu0 %v112_v12  ;;  %v890_v12 = vld [vmem:[#allocation2 + $0x14] sm:$0xf] }
  0x99   :  { %142 = vmatpush1.bf16.msra.mxu0 %v111_v13 }
  0x9a   :  { %v105_v15 = vpop.permute.xlu0 %104  ;;  %v107_v16 = vpop.permute.xlu1 %106 }
  0x9b   :  { %v114_v17 = vsel %vm110_vm0, %v103_v11, %v105_v15  ;;  %v115_v22 = vsel %vm110_vm0, %v105_v15, %v107_v16 }
  0x9c   :  { %1669 = vmatmul.mubr.msk.bf16.vlgmr.msra.gmra.mxu0 %vm123_vm1, %v58_v14  ;;  %182 = vmatprep.subr.bf16.mxu1 %v114_v17 }
  0x9d   :  { %183 = vmatpush1.bf16.msra.mxu1 %v113_v18  ;;  %241 = vmatprep.mubr.bf16.mxu0 %v1804_v0 }
  0x9e   :  { %v109_v19 = vpop.permute.xlu0 %108  ;;  %297 = vmatprep.subr.bf16.mxu1 %v1854_v1  ;;  %v411_v20 = vpop.permute.xlu1 %410 }
  0x9f   :  { %v116_v21 = vsel %vm110_vm0, %v107_v16, %v109_v19 }
  0xa0   :  { %1670 = vmatmul.mubr.msk.bf16.vlgmr.msra.gmra.mxu1 %vm123_vm1, %v58_v14  ;;  %223 = vmatprep.subr.bf16.mxu0 %v116_v21 }
  0xa1   :  { %224 = vmatpush1.bf16.msra.mxu0 %v115_v22  ;;  %298 = vmatpush1.bf16.msra.mxu1 %v1856_v2 }
  0xa2   :  { %v413_v23 = vpop.permute.xlu0 %412  ;;  %338 = vmatprep.subr.bf16.mxu0 %v1862_v4  ;;  %315 = vmatprep.mubr.bf16.mxu1 %v1804_v0  ;;  %v409_v24 = vpop.permute.xlu1 %408 }
  0xa3   :  { %379 = vmatprep.subr.bf16.mxu1 %v1868_v6  ;;  %v424_v25 = vsel %vm422_vm2, %v411_v20, %v413_v23  ;;  %v423_v32 = vsel %vm422_vm2, %v409_v24, %v411_v20 }
  0xa4   :  { %1671 = vmatmul.mubr.msk.bf16.vlgmr.msra.gmra.mxu0 %vm123_vm1, %v58_v14 }
  0xa5   :  { %339 = vmatpush1.bf16.msra.mxu0 %v1859_v3  ;;  %356 = vmatprep.mubr.bf16.mxu0 %v1804_v0 }
  0xa6   :  { %v415_v27 = vpop.permute.xlu0 %414  ;;  %452 = vmatprep.subr.bf16.mxu0 %v424_v25  ;;  %v417_v28 = vpop.permute.xlu1 %416  ;;  %v1051_v25 = vld [vmem:[#allocation2 + $0x18] sm:$0xf] }
  0xa7   :  { %v426_v29 = vsel %vm422_vm2, %v415_v27, %v417_v28  ;;  %v425_v36 = vsel %vm422_vm2, %v413_v23, %v415_v27 }
  0xa8   :  { %1678 = vmatmul.mubr.msk.bf16.vlgmr.msra.gmra.mxu1 %vm123_vm1, %v50_v26 }
  0xa9   :  { %380 = vmatpush1.bf16.msra.mxu1 %v1865_v5  ;;  %397 = vmatprep.mubr.bf16.mxu1 %v1804_v0 }
  0xaa   :  { %493 = vmatprep.subr.bf16.mxu1 %v426_v29  ;;  %v419_v30 = vpop.permute.xlu0 %418  ;;  %v421_v31 = vpop.permute.xlu1 %420 }
  0xab   :  { %v428_v33 = vsel %vm422_vm2, %v419_v30, %v421_v31  ;;  %v427_v41 = vsel %vm422_vm2, %v417_v28, %v419_v30 }
  0xac   :  { %1679 = vmatmul.mubr.msk.bf16.vlgmr.msra.gmra.mxu0 %vm123_vm1, %v50_v26 }
  0xad   :  { %453 = vmatpush1.bf16.msra.mxu0 %v423_v32  ;;  %470 = vmatprep.mubr.bf16.mxu0 %v1804_v0 }
  0xae   :  { %534 = vmatprep.subr.bf16.mxu0 %v428_v33  ;;  %v572_v34 = vpop.permute.xlu0 %571  ;;  %v574_v35 = vpop.permute.xlu1 %573 }
  0xaf   :  { %v585_v37 = vsel %vm583_vm3, %v572_v34, %v574_v35 }
  0xb0   :  { %1680 = vmatmul.mubr.msk.bf16.vlgmr.msra.gmra.mxu1 %vm123_vm1, %v50_v26 }
  0xb1   :  { %494 = vmatpush1.bf16.msra.mxu1 %v425_v36  ;;  %511 = vmatprep.mubr.bf16.mxu1 %v1804_v0  ;;  %v1212_v36 = vld [vmem:[#allocation2 + $0x1c] sm:$0xf] }
  0xb2   :  { %613 = vmatprep.subr.bf16.mxu1 %v585_v37  ;;  %v570_v39 = vpop.permute.xlu0 %569  ;;  %v576_v40 = vpop.permute.xlu1 %575 }
  0xb3   :  { %v584_v45 = vsel %vm583_vm3, %v570_v39, %v572_v34  ;;  %v586_v49 = vsel %vm583_vm3, %v574_v35, %v576_v40 }
  0xb4   :  { %1681 = vmatmul.mubr.msk.bf16.vlgmr.msra.gmra.mxu0 %vm123_vm1, %v407_v38 }
  0xb5   :  { %535 = vmatpush1.bf16.msra.mxu0 %v427_v41  ;;  %552 = vmatprep.mubr.bf16.mxu0 %v1804_v0 }
  0xb6   :  { %v578_v42 = vpop.permute.xlu0 %577  ;;  %v580_v43 = vpop.permute.xlu1 %579 }
  0xb7   :  { %v587_v44 = vsel %vm583_vm3, %v576_v40, %v578_v42  ;;  %v588_v54 = vsel %vm583_vm3, %v578_v42, %v580_v43 }
  0xb8   :  { %1682 = vmatmul.mubr.msk.bf16.vlgmr.msra.gmra.mxu1 %vm123_vm1, %v407_v38  ;;  %654 = vmatprep.subr.bf16.mxu0 %v587_v44 }
  0xb9   :  { %614 = vmatpush1.bf16.msra.mxu1 %v584_v45  ;;  %631 = vmatprep.mubr.bf16.mxu1 %v1804_v0 }
  0xba   :  { %v582_v46 = vpop.permute.xlu0 %581  ;;  %v733_v47 = vpop.permute.xlu1 %732 }
  0xbb   :  { %v589_v48 = vsel %vm583_vm3, %v580_v43, %v582_v46 }
  0xbc   :  { %1683 = vmatmul.mubr.msk.bf16.vlgmr.msra.gmra.mxu0 %vm123_vm1, %v407_v38  ;;  %695 = vmatprep.subr.bf16.mxu1 %v589_v48 }
  0xbd   :  { %655 = vmatpush1.bf16.msra.mxu0 %v586_v49  ;;  %672 = vmatprep.mubr.bf16.mxu0 %v1804_v0  ;;  %v1373_v49 = vld [vmem:[#allocation2 + $0x20] sm:$0xf] }
  0xbe   :  { %v735_v51 = vpop.permute.xlu0 %734  ;;  %v731_v52 = vpop.permute.xlu1 %730 }
  0xbf   :  { %v746_v53 = vsel %vm744_vm4, %v733_v47, %v735_v51  ;;  %v745_v57 = vsel %vm744_vm4, %v731_v52, %v733_v47 }
  0xc0   :  { %1684 = vmatmul.mubr.msk.bf16.vlgmr.msra.gmra.mxu1 %vm123_vm1, %v568_v50  ;;  %774 = vmatprep.subr.bf16.mxu0 %v746_v53 }
  0xc1   :  { %696 = vmatpush1.bf16.msra.mxu1 %v588_v54  ;;  %713 = vmatprep.mubr.bf16.mxu1 %v1804_v0 }
  0xc2   :  { %v737_v55 = vpop.permute.xlu0 %736  ;;  %v739_v56 = vpop.permute.xlu1 %738 }
  0xc3   :  { %v748_v58 = vsel %vm744_vm4, %v737_v55, %v739_v56  ;;  %v747_v61 = vsel %vm744_vm4, %v735_v51, %v737_v55 }
  0xc4   :  { %1685 = vmatmul.mubr.msk.bf16.vlgmr.msra.gmra.mxu0 %vm123_vm1, %v568_v50  ;;  %815 = vmatprep.subr.bf16.mxu1 %v748_v58 }
  0xc5   :  { %775 = vmatpush1.bf16.msra.mxu0 %v745_v57  ;;  %792 = vmatprep.mubr.bf16.mxu0 %v1804_v0 }
  0xc6   :  { %v741_v59 = vpop.permute.xlu0 %740  ;;  %v743_v60 = vpop.permute.xlu1 %742 }
  0xc7   :  { %v750_v62 = vsel %vm744_vm4, %v741_v59, %v743_v60  ;;  %v749_v3 = vsel %vm744_vm4, %v739_v56, %v741_v59 }
  0xc8   :  { %1686 = vmatmul.mubr.msk.bf16.vlgmr.msra.gmra.mxu1 %vm123_vm1, %v568_v50  ;;  %856 = vmatprep.subr.bf16.mxu0 %v750_v62 }
  0xc9   :  { %816 = vmatpush1.bf16.msra.mxu1 %v747_v61  ;;  %833 = vmatprep.mubr.bf16.mxu1 %v1804_v0 }
  0xca   :  { %v894_v1 = vpop.permute.xlu0 %893  ;;  %v896_v2 = vpop.permute.xlu1 %895 }
  0xcb   :  { %v907_v4 = vsel %vm905_vm5, %v894_v1, %v896_v2 }
  0xcc   :  { %1687 = vmatmul.mubr.msk.bf16.vlgmr.msra.gmra.mxu0 %vm123_vm1, %v729_v63  ;;  %935 = vmatprep.subr.bf16.mxu1 %v907_v4 }
  0xcd   :  { %857 = vmatpush1.bf16.msra.mxu0 %v749_v3  ;;  %874 = vmatprep.mubr.bf16.mxu0 %v1804_v0 }
  0xce   :  { %v892_v5 = vpop.permute.xlu0 %891  ;;  %v898_v7 = vpop.permute.xlu1 %897 }
  0xcf   :  { %v906_v6 = vsel %vm905_vm5, %v892_v5, %v894_v1  ;;  %v908_v11 = vsel %vm905_vm5, %v896_v2, %v898_v7 }
  0xd0   :  { %1688 = vmatmul.mubr.msk.bf16.vlgmr.msra.gmra.mxu1 %vm123_vm1, %v729_v63 }
  0xd1   :  { %936 = vmatpush1.bf16.msra.mxu1 %v906_v6  ;;  %953 = vmatprep.mubr.bf16.mxu1 %v1804_v0 }
  0xd2   :  { %v900_v8 = vpop.permute.xlu0 %899  ;;  %v902_v9 = vpop.permute.xlu1 %901 }
  0xd3   :  { %v909_v10 = vsel %vm905_vm5, %v898_v7, %v900_v8  ;;  %v910_v16 = vsel %vm905_vm5, %v900_v8, %v902_v9 }
  0xd4   :  { %1689 = vmatmul.mubr.msk.bf16.vlgmr.msra.gmra.mxu0 %vm123_vm1, %v729_v63  ;;  %976 = vmatprep.subr.bf16.mxu0 %v909_v10 }
  0xd5   :  { %977 = vmatpush1.bf16.msra.mxu0 %v908_v11  ;;  %994 = vmatprep.mubr.bf16.mxu0 %v1804_v0 }
  0xd6   :  { %v904_v13 = vpop.permute.xlu0 %903  ;;  %v1055_v14 = vpop.permute.xlu1 %1054 }
  0xd7   :  { %v911_v15 = vsel %vm905_vm5, %v902_v9, %v904_v13 }
  0xd8   :  { %1690 = vmatmul.mubr.msk.bf16.vlgmr.msra.gmra.mxu1 %vm123_vm1, %v890_v12  ;;  %1017 = vmatprep.subr.bf16.mxu1 %v911_v15 }
  0xd9   :  { %1018 = vmatpush1.bf16.msra.mxu1 %v910_v16  ;;  %1035 = vmatprep.mubr.bf16.mxu1 %v1804_v0 }
  0xda   :  { %v1057_v17 = vpop.permute.xlu0 %1056  ;;  %v1053_v18 = vpop.permute.xlu1 %1052 }
  0xdb   :  { %v1068_v19 = vsel %vm1066_vm6, %v1055_v14, %v1057_v17  ;;  %v1067_v20 = vsel %vm1066_vm6, %v1053_v18, %v1055_v14 }
  0xdc   :  { %1691 = vmatmul.mubr.msk.bf16.vlgmr.msra.gmra.mxu0 %vm123_vm1, %v890_v12  ;;  %1096 = vmatprep.subr.bf16.mxu0 %v1068_v19 }
  0xdd   :  { %1097 = vmatpush1.bf16.msra.mxu0 %v1067_v20  ;;  %1114 = vmatprep.mubr.bf16.mxu0 %v1804_v0 }
  0xde   :  { %v1059_v21 = vpop.permute.xlu0 %1058  ;;  %v1061_v23 = vpop.permute.xlu1 %1060 }
  0xdf   :  { %v1069_v22 = vsel %vm1066_vm6, %v1057_v17, %v1059_v21  ;;  %v1070_v24 = vsel %vm1066_vm6, %v1059_v21, %v1061_v23 }
  0xe0   :  { %1692 = vmatmul.mubr.msk.bf16.vlgmr.msra.gmra.mxu1 %vm123_vm1, %v890_v12  ;;  %1137 = vmatprep.subr.bf16.mxu1 %v1070_v24 }
  0xe1   :  { %1155 = vmatprep.mubr.bf16.mxu1 %v1804_v0  ;;  %1138 = vmatpush1.bf16.msra.mxu1 %v1069_v22 }
  0xe2   :  { %v1063_v26 = vpop.permute.xlu0 %1062  ;;  %v1065_v28 = vpop.permute.xlu1 %1064 }
  0xe3   :  { %v1071_v27 = vsel %vm1066_vm6, %v1061_v23, %v1063_v26  ;;  %v1072_v29 = vsel %vm1066_vm6, %v1063_v26, %v1065_v28 }
  0xe4   :  { %1693 = vmatmul.mubr.msk.bf16.vlgmr.msra.gmra.mxu0 %vm123_vm1, %v1051_v25  ;;  %1178 = vmatprep.subr.bf16.mxu0 %v1072_v29 }
  0xe5   :  { %1196 = vmatprep.mubr.bf16.mxu0 %v1804_v0  ;;  %1179 = vmatpush1.bf16.msra.mxu0 %v1071_v27 }
  0xe6   :  { %v1216_v30 = vpop.permute.xlu0 %1215  ;;  %v1218_v31 = vpop.permute.xlu1 %1217 }
  0xe7   :  { %v1229_v32 = vsel %vm1227_vm7, %v1216_v30, %v1218_v31 }
  0xe8   :  { %1694 = vmatmul.mubr.msk.bf16.vlgmr.msra.gmra.mxu1 %vm123_vm1, %v1051_v25  ;;  %1257 = vmatprep.subr.bf16.mxu1 %v1229_v32 }
  0xe9   :  { %1275 = vmatprep.mubr.bf16.mxu1 %v1804_v0 }
  0xea   :  { %v1214_v33 = vpop.permute.xlu0 %1213  ;;  %v1220_v35 = vpop.permute.xlu1 %1219 }
  0xeb   :  { %v1228_v34 = vsel %vm1227_vm7, %v1214_v33, %v1216_v30  ;;  %v1230_v40 = vsel %vm1227_vm7, %v1218_v31, %v1220_v35 }
  0xec   :  { %1695 = vmatmul.mubr.msk.bf16.vlgmr.msra.gmra.mxu0 %vm123_vm1, %v1051_v25  ;;  %1258 = vmatpush1.bf16.msra.mxu1 %v1228_v34 }
  0xed   :  { %1316 = vmatprep.mubr.bf16.mxu0 %v1804_v0 }
  0xee   :  { %v1222_v37 = vpop.permute.xlu0 %1221  ;;  %v1224_v38 = vpop.permute.xlu1 %1223 }
  0xef   :  { %v1231_v39 = vsel %vm1227_vm7, %v1220_v35, %v1222_v37  ;;  %v1232_v44 = vsel %vm1227_vm7, %v1222_v37, %v1224_v38 }
  0xf0   :  { %1696 = vmatmul.mubr.msk.bf16.vlgmr.msra.gmra.mxu1 %vm123_vm1, %v1212_v36  ;;  %1298 = vmatprep.subr.bf16.mxu0 %v1231_v39 }
  0xf1   :  { %1299 = vmatpush1.bf16.msra.mxu0 %v1230_v40  ;;  %1357 = vmatprep.mubr.bf16.mxu1 %v1804_v0 }
  0xf2   :  { %v1226_v41 = vpop.permute.xlu0 %1225  ;;  %v1377_v42 = vpop.permute.xlu1 %1376 }
  0xf3   :  { %v1233_v43 = vsel %vm1227_vm7, %v1224_v38, %v1226_v41 }
  0xf4   :  { %1697 = vmatmul.mubr.msk.bf16.vlgmr.msra.gmra.mxu0 %vm123_vm1, %v1212_v36  ;;  %1339 = vmatprep.subr.bf16.mxu1 %v1233_v43 }
  0xf5   :  { %1340 = vmatpush1.bf16.msra.mxu1 %v1232_v44  ;;  %1436 = vmatprep.mubr.bf16.mxu0 %v1804_v0 }
  0xf6   :  { %v1379_v45 = vpop.permute.xlu0 %1378  ;;  %v1375_v46 = vpop.permute.xlu1 %1374 }
  0xf7   :  { %v1390_v47 = vsel %vm1388_vm8, %v1377_v42, %v1379_v45  ;;  %v1389_v48 = vsel %vm1388_vm8, %v1375_v46, %v1377_v42 }
  0xf8   :  { %1698 = vmatmul.mubr.msk.bf16.vlgmr.msra.gmra.mxu1 %vm123_vm1, %v1212_v36  ;;  %1418 = vmatprep.subr.bf16.mxu0 %v1390_v47 }
  0xf9   :  { %1419 = vmatpush1.bf16.msra.mxu0 %v1389_v48  ;;  %1477 = vmatprep.mubr.bf16.mxu1 %v1804_v0 }
  0xfa   :  { %v1381_v50 = vpop.permute.xlu0 %1380  ;;  %v1383_v52 = vpop.permute.xlu1 %1382 }
  0xfb   :  { %v1391_v51 = vsel %vm1388_vm8, %v1379_v45, %v1381_v50  ;;  %v1392_v53 = vsel %vm1388_vm8, %v1381_v50, %v1383_v52 }
  0xfc   :  { %1699 = vmatmul.mubr.msk.bf16.vlgmr.msra.gmra.mxu0 %vm123_vm1, %v1373_v49  ;;  %1459 = vmatprep.subr.bf16.mxu1 %v1392_v53 }
  0xfd   :  { %1518 = vmatprep.mubr.bf16.mxu0 %v1804_v0  ;;  %1460 = vmatpush1.bf16.msra.mxu1 %v1391_v51 }
  0xfe   :  { %v1385_v54 = vpop.permute.xlu0 %1384  ;;  %v1387_v56 = vpop.permute.xlu1 %1386 }
  0xff   :  { %v1393_v55 = vsel %vm1388_vm8, %v1383_v52, %v1385_v54  ;;  %v1394_v57 = vsel %vm1388_vm8, %v1385_v54, %v1387_v56 }
 0x100   :  { %1700 = vmatmul.mubr.msk.bf16.vlgmr.msra.gmra.mxu1 %vm123_vm1, %v1373_v49  ;;  %1500 = vmatprep.subr.bf16.mxu0 %v1394_v57 }
 0x101   :  { %1501 = vmatpush1.bf16.msra.mxu0 %v1393_v55 }
 0x104   :  { %1701 = vmatmul.mubr.msk.bf16.vlgmr.msra.gmra.mxu0 %vm123_vm1, %v1373_v49 }
 0x15c   :  { %v161_v58 = vpop.f32.mrf.mxu0 }
 0x15e   :  { %v163_v59 = vpop.f32.mrf.mxu0 }
 0x160   :  { %v165_v60 = vpop.f32.mrf.mxu0  ;;  %v202_v61 = vpop.f32.mrf.mxu1 }
 0x162   :  { %v166_v62 = vpop.f32.mrf.mxu0  ;;  %v204_v63 = vpop.f32.mrf.mxu1 }
 0x164   :  { %v206_v0 = vpop.f32.mrf.mxu1  ;;  %v243_v1 = vpop.f32.mrf.mxu0 }
 0x166   :  { %v207_v2 = vpop.f32.mrf.mxu1  ;;  %v245_v3 = vpop.f32.mrf.mxu0 }
 0x168   :  { %v247_v4 = vpop.f32.mrf.mxu0  ;;  %v317_v5 = vpop.f32.mrf.mxu1 }
 0x169   :  { %v318_v6 = vadd.f32 %v317_v5, %v161_v58 }
 0x16a   :  { %v248_v7 = vpop.f32.mrf.mxu0  ;;  %v319_v8 = vpop.f32.mrf.mxu1 }
 0x16b   :  { %v2020_v9 = vadd.f32 %v319_v8, %v163_v59 }
 0x16c   :  { %v321_v10 = vpop.f32.mrf.mxu1  ;;  %v358_v11 = vpop.f32.mrf.mxu0 }
 0x16d   :  { %v2022_v12 = vadd.f32 %v358_v11, %v202_v61 }
 0x16e   :  { %v322_v13 = vpop.f32.mrf.mxu1  ;;  %v360_v14 = vpop.f32.mrf.mxu0 }
 0x16f   :  { %v2024_v15 = vadd.f32 %v360_v14, %v204_v63 }
 0x170   :  { %v362_v16 = vpop.f32.mrf.mxu0  ;;  %v399_v17 = vpop.f32.mrf.mxu1 }
 0x171   :  { %v2026_v18 = vadd.f32 %v399_v17, %v243_v1 }
 0x172   :  { %v363_v19 = vpop.f32.mrf.mxu0  ;;  %v401_v20 = vpop.f32.mrf.mxu1 }
 0x173   :  { %v2028_v21 = vadd.f32 %v401_v20, %v245_v3 }
 0x174   :  { %v403_v22 = vpop.f32.mrf.mxu1  ;;  %v472_v23 = vpop.f32.mrf.mxu0 }
 0x175   :  { %v2030_v24 = vadd.f32 %v472_v23, %v318_v6 }
 0x176   :  { %v404_v25 = vpop.f32.mrf.mxu1  ;;  %v474_v26 = vpop.f32.mrf.mxu0 }
 0x177   :  { %v1535_v25 = vlaneseq }
 0x178   :  { %v476_v27 = vpop.f32.mrf.mxu0  ;;  %v2032_v28 = vpop.f32.mrf.mxu1 }
 0x17a   :  { %v477_v29 = vpop.f32.mrf.mxu0  ;;  %v2034_v30 = vpop.f32.mrf.mxu1 }
 0x17c   :  { %v517_v31 = vpop.f32.mrf.mxu1  ;;  %v2036_v32 = vpop.f32.mrf.mxu0 }
 0x17e   :  { %v518_v33 = vpop.f32.mrf.mxu1  ;;  %v2038_v34 = vpop.f32.mrf.mxu0 }
 0x180   :  { %v558_v35 = vpop.f32.mrf.mxu0  ;;  %v633_v36 = vpop.f32.mrf.mxu1 }
 0x181   :  { %v562_v35 = vadd.f32 %v474_v26, %v2020_v9  ;;  %v564_v9 = vadd.f32 %v2034_v30, %v2024_v15 }
 0x182   :  { %v559_v37 = vpop.f32.mrf.mxu0  ;;  %v635_v38 = vpop.f32.mrf.mxu1 }
 0x183   :  { %v722_v37 = vadd.f32 %v633_v36, %v2030_v24 }
 0x184   :  { %v637_v39 = vpop.f32.mrf.mxu1  ;;  %v674_v40 = vpop.f32.mrf.mxu0 }
 0x185   :  { %v2064_v39 = vshrl.u32 %v1535_v25, 7 }
 0x186   :  { %v638_v41 = vpop.f32.mrf.mxu1  ;;  %v2040_v42 = vpop.f32.mrf.mxu0 }
 0x188   :  { %v678_v43 = vpop.f32.mrf.mxu0  ;;  %v2042_v44 = vpop.f32.mrf.mxu1 }
 0x18a   :  { %v679_v45 = vpop.f32.mrf.mxu0  ;;  %v2044_v46 = vpop.f32.mrf.mxu1 }
 0x18b   :  { %v723_v45 = vadd.f32 %v635_v38, %v562_v35  ;;  %v2074_v38 = vld [vmem:[%s2125_s2] sm:$0x3f] }
 0x18c   :  { %v719_v47 = vpop.f32.mrf.mxu1  ;;  %v794_v48 = vpop.f32.mrf.mxu0 }
 0x18d   :  { %v883_v47 = vadd.f32 %v794_v48, %v722_v37  ;;  %v1541_v48 = vsub.s32 1, %v2064_v39 }
 0x18e   :  { %v720_v49 = vpop.f32.mrf.mxu1  ;;  %v796_v50 = vpop.f32.mrf.mxu0 }
 0x18f   :  { %v563_v49 = vadd.f32 %v2032_v28, %v2022_v12 }
 0x190   :  { %v798_v51 = vpop.f32.mrf.mxu0  ;;  %v835_v52 = vpop.f32.mrf.mxu1 }
 0x191   :  { %v724_v26 = vadd.f32 %v674_v40, %v563_v49 }
 0x192   :  { %v799_v53 = vpop.f32.mrf.mxu0  ;;  %v2046_v54 = vpop.f32.mrf.mxu1 }
 0x194   :  { %v839_v55 = vpop.f32.mrf.mxu1  ;;  %v2048_v56 = vpop.f32.mrf.mxu0 }
 0x195   :  { %v884_v55 = vadd.f32 %v796_v50, %v723_v45  ;;  %v565_v50 = vadd.f32 %v2036_v32, %v2026_v18  ;;  %v1542_v18 = vrot.slane %v2074_v38, %v1541_v48  ;;  %v566_v32 = vadd.f32 %v2038_v34, %v2028_v21 }
 0x196   :  { %v840_v57 = vpop.f32.mrf.mxu1  ;;  %v2050_v58 = vpop.f32.mrf.mxu0 }
 0x198   :  { %v880_v59 = vpop.f32.mrf.mxu0  ;;  %v955_v60 = vpop.f32.mrf.mxu1 }
 0x199   :  { %v1044_v57 = vadd.f32 %v955_v60, %v883_v47  ;;  %v1537_v59 = vsub.s32 0, %v2064_v39  ;;  %v725_v60 = vadd.f32 %v2040_v42, %v564_v9 }
 0x19a   :  { %v881_v61 = vpop.f32.mrf.mxu0  ;;  %v957_v62 = vpop.f32.mrf.mxu1 }
 0x19b   :  { %v1045_v12 = vadd.f32 %v957_v62, %v884_v55  ;;  %v885_v61 = vadd.f32 %v835_v52, %v724_v26 }
 0x19c   :  { %v959_v63 = vpop.f32.mrf.mxu1  ;;  %v996_v0 = vpop.f32.mrf.mxu0 }
 0x19d   :  { %v1046_v62 = vadd.f32 %v996_v0, %v885_v61  ;;  %v727_v0 = vadd.f32 %v2044_v46, %v566_v32  ;;  %v1610_v32 = vld [vmem:[%s2126_s3] sm:$0xff]  ;;  %s1813_s3 = smov [#allocation7]  }
 0x19e   :  { %v960_v1 = vpop.f32.mrf.mxu1  ;;  %v2052_v2 = vpop.f32.mrf.mxu0 }
 0x19f   :  { %v1538_v1 = vrot.slane %v2074_v38, %v1537_v59 }
 0x1a0   :  { %v1000_v3 = vpop.f32.mrf.mxu0  ;;  %v2054_v4 = vpop.f32.mrf.mxu1 }
 0x1a1   :  { %v1545_v3 = vsub.s32 2, %v2064_v39 }
 0x1a2   :  { %v1001_v5 = vpop.f32.mrf.mxu0  ;;  %v2056_v6 = vpop.f32.mrf.mxu1 }
 0x1a3   :  { %v726_v5 = vadd.f32 %v2042_v44, %v565_v50  ;;  %v1546_v21 = vrot.slane %v2074_v38, %v1545_v3 }
 0x1a4   :  { %v1041_v7 = vpop.f32.mrf.mxu1  ;;  %v1116_v8 = vpop.f32.mrf.mxu0 }
 0x1a5   :  { %v1205_v28 = vadd.f32 %v1116_v8, %v1044_v57  ;;  %v886_v7 = vadd.f32 %v2046_v54, %v725_v60 }
 0x1a6   :  { %v1042_v10 = vpop.f32.mrf.mxu1  ;;  %v1118_v11 = vpop.f32.mrf.mxu0 }
 0x1a7   :  { %v1206_v30 = vadd.f32 %v1118_v11, %v1045_v12  ;;  %v1549_v11 = vsub.s32 3, %v2064_v39 }
 0x1a8   :  { %v1120_v13 = vpop.f32.mrf.mxu0  ;;  %v1157_v14 = vpop.f32.mrf.mxu1 }
 0x1a9   :  { %v887_v13 = vadd.f32 %v2048_v56, %v726_v5  ;;  %v1207_v44 = vadd.f32 %v1157_v14, %v1046_v62  ;;  %v1553_v56 = vsub.s32 4, %v2064_v39  ;;  %v1550_v46 = vrot.slane %v2074_v38, %v1549_v11 }
 0x1aa   :  { %v1121_v16 = vpop.f32.mrf.mxu0  ;;  %v1159_v17 = vpop.f32.mrf.mxu1 }
 0x1ab   :  { %v1047_v16 = vadd.f32 %v2052_v2, %v886_v7  ;;  %v1048_v34 = vadd.f32 %v2054_v4, %v887_v13  ;;  %v888_v2 = vadd.f32 %v2050_v58, %v727_v0  ;;  %v1557_v4 = vsub.s32 5, %v2064_v39 }
 0x1ac   :  { %v1161_v19 = vpop.f32.mrf.mxu1  ;;  %v2058_v20 = vpop.f32.mrf.mxu0  ;;  %v1554_v59 = vrot.slane %v2074_v38, %v1553_v56 }
 0x1ad   :  { %v1209_v35 = vadd.f32 %v2058_v20, %v1048_v34  ;;  %v1558_v60 = vrot.slane %v2074_v38, %v1557_v4  ;;  %v1622_v38 = vld [vmem:[%s2127_s4] sm:$0xff]  ;;  %s1652_s4 = sshll.u32 %s1813_s3, 4  ;;  %s1653_s4 = int_to_ptr.vmem [resolvable:$true] %s1652_s4 }
 0x1ae   :  { %v1162_v22 = vpop.f32.mrf.mxu1  ;;  %v2060_v23 = vpop.f32.mrf.mxu0  ;;  %s1772_s18 = scalar_lea.vmem %s1653_s4, 768  ;;  %p1777_p11 = scmp.lt.s32.totalorder %s1653_s4, %s1653_s4 }
 0x1af   :  { %p1773_p10 = scmp.ne.s32.totalorder %s1653_s4, %s1772_s18  ;;  %p1778_p12 = scmp.lt.s32.totalorder %s1772_s18, %s1772_s18 }
 0x1b0   :  { %v1202_v27 = vpop.f32.mrf.mxu0  ;;  %v1277_v29 = vpop.f32.mrf.mxu1 }
 0x1b1   :  { %v1366_v40 = vadd.f32 %v1277_v29, %v1205_v28  ;;  %v1208_v27 = vadd.f32 %v1159_v17, %v1047_v16  ;;  %v1049_v17 = vadd.f32 %v2056_v6, %v888_v2  ;;  %p1779_p13 = por %p1778_p12, %p1777_p11 }
 0x1b2   :  { %v1203_v31 = vpop.f32.mrf.mxu0  ;;  %v1279_v33 = vpop.f32.mrf.mxu1 }
 0x1b3   :  { %v1367_v42 = vadd.f32 %v1279_v33, %v1206_v30  ;;  %v1210_v20 = vadd.f32 %v2060_v23, %v1049_v17  ;;  %p1780_p0 = pnand %p1779_p13, %p1773_p10 }
 0x1b4   :  { %v1281_v41 = vpop.f32.mrf.mxu1  ;;  %v1318_v43 = vpop.f32.mrf.mxu0 }
 0x1b5   :  { %v1368_v29 = vadd.f32 %v1318_v43, %v1207_v44 }
 0x1b6   :  { %v1282_v51 = vpop.f32.mrf.mxu1  ;;  %v1320_v53 = vpop.f32.mrf.mxu0 }
 0x1b7   :  { %v1369_v37 = vadd.f32 %v1320_v53, %v1208_v27 }
 0x1b8   :  { %v1322_v24 = vpop.f32.mrf.mxu0  ;;  %v1359_v36 = vpop.f32.mrf.mxu1 }
 0x1b9   :  { %v1370_v58 = vadd.f32 %v1359_v36, %v1209_v35 }
 0x1ba   :  { %v1323_v63 = vpop.f32.mrf.mxu0  ;;  %v1361_v15 = vpop.f32.mrf.mxu1 }
 0x1bb   :  { %v1371_v6 = vadd.f32 %v1361_v15, %v1210_v20 }
 0x1bc   :  { %v1363_v8 = vpop.f32.mrf.mxu1  ;;  %v1438_v10 = vpop.f32.mrf.mxu0 }
 0x1bd   :  { %v2087_v52 = vadd.f32 %v1438_v10, %v1366_v40 }
 0x1be   :  { %v1364_v19 = vpop.f32.mrf.mxu1  ;;  %v1440_v54 = vpop.f32.mrf.mxu0 }
 0x1bf   :  { %v1565_v22 = vmul.f32 %v1538_v1, %v2087_v52  ;;  %v2094_v25 = vadd.f32 %v1440_v54, %v1367_v42 }
 0x1c0   :  { %v1442_v31 = vpop.f32.mrf.mxu0  ;;  %v1479_v33 = vpop.f32.mrf.mxu1 }
 0x1c1   :  { %v1566_v14 = vmul.f32 %v1542_v18, %v2094_v25  ;;  %v2103_v41 = vadd.f32 %v1479_v33, %v1368_v29  ;;  %v1578_v43 = vmul.f32 %v1565_v22, %v1565_v22 }
 0x1c2   :  { %v1443_v45 = vpop.f32.mrf.mxu0  ;;  %v1481_v51 = vpop.f32.mrf.mxu1 }
 0x1c3   :  { %v1571_v47 = vadd.f32 %v1566_v14, %v1565_v22  ;;  %v1579_v49 = vmul.f32 %v1566_v14, %v1566_v14  ;;  %v1567_v55 = vmul.f32 %v1546_v21, %v2103_v41  ;;  %v1530_v57 = vadd.f32 %v1481_v51, %v1369_v37 }
 0x1c4   :  { %v1483_v9 = vpop.f32.mrf.mxu1  ;;  %v1520_v26 = vpop.f32.mrf.mxu0 }
 0x1c5   :  { %v1584_v53 = vadd.f32 %v1579_v49, %v1578_v43  ;;  %v1572_v24 = vadd.f32 %v1571_v47, %v1567_v55  ;;  %v1580_v48 = vmul.f32 %v1567_v55, %v1567_v55  ;;  %v1568_v39 = vmul.f32 %v1550_v46, %v1530_v57 }
 0x1c6   :  { %v1531_v12 = vadd.f32 %v1520_v26, %v1370_v58  ;;  %v1484_v28 = vpop.f32.mrf.mxu1  ;;  %v1522_v50 = vpop.f32.mrf.mxu0 }
 0x1c7   :  { %v1585_v36 = vadd.f32 %v1584_v53, %v1580_v48  ;;  %v1573_v61 = vadd.f32 %v1572_v24, %v1568_v39  ;;  %v1581_v63 = vmul.f32 %v1568_v39, %v1568_v39  ;;  %v1532_v40 = vadd.f32 %v1522_v50, %v1371_v6 }
 0x1c8   :  { %v1569_v30 = vmul.f32 %v1554_v59, %v1531_v12  ;;  %v1524_v1 = vpop.f32.mrf.mxu0 }
 0x1c9   :  { %v1586_v5 = vadd.f32 %v1585_v36, %v1581_v63  ;;  %v1570_v7 = vmul.f32 %v1558_v60, %v1532_v40 }
 0x1ca   :  { %v1582_v3 = vmul.f32 %v1569_v30, %v1569_v30  ;;  %v1574_v23 = vadd.f32 %v1573_v61, %v1569_v30  ;;  %v1525_v62 = vpop.f32.mrf.mxu0 }
 0x1cb   :  { %v1583_v18 = vmul.f32 %v1570_v7, %v1570_v7 }
 0x1cc   :  { %v1587_v8 = vadd.f32 %v1586_v5, %v1582_v3  ;;  %v1575_v10 = vadd.f32 %v1574_v23, %v1570_v7 }
 0x1ce   :  { %1576 = vadd.xlane.f32.xlu0 %v1575_v10  ;;  %v1588_v15 = vadd.f32 %v1587_v8, %v1583_v18 }
 0x1d0   :  { %1589 = vadd.xlane.f32.xlu1 %v1588_v15 }
 0x1e1   :  { %1625 = vperm.xlu1 %1719, %v1622_v38  }
 0x1e4   :  { %1613 = vperm.xlu0 %1718, %v1610_v32  }
 0x257   :  { %v1577_v42 = vpop.xlane.xlu0 %1576 }
 0x258   :  { %v1591_v11 = vmul.f32 0.001953125, %v1577_v42 }
 0x259   :  { %v1590_v13 = vpop.xlane.xlu1 %1589 }
 0x25a   :  { %v1592_v16 = vmul.f32 0.001953125, %v1590_v13  ;;  %v1593_v44 = vmul.f32 %v1591_v11, %v1591_v11  ;;  %v1596_v22 = vsub.f32 %v2087_v52, %v1591_v11  ;;  %v1597_v21 = vsub.f32 %v2094_v25, %v1591_v11 }
 0x25b   :  { %v1598_v34 = vsub.f32 %v2103_v41, %v1591_v11  ;;  %v1599_v27 = vsub.f32 %v1530_v57, %v1591_v11  ;;  %v1600_v31 = vsub.f32 %v1531_v12, %v1591_v11  ;;  %v1601_v56 = vsub.f32 %v1532_v40, %v1591_v11 }
 0x25c   :  { %v1594_v19 = vsub.f32 %v1592_v16, %v1593_v44 }
 0x25d   :  { %v1626_v4 = vpop.permute.xlu1 %1625 }
 0x25e   :  { %v1595_v54 = vmax.f32 %v1594_v19, 0.0 }
 0x25f   :  { %v1614_v2 = vpop.permute.xlu0 %1613 }
 0x260   :  { %v1602_v0 = vadd.f32 1e-05, %v1595_v54 }
 0x262   :  { %1730 = vrsqrt.f32 %v1602_v0 }
 0x26f   :  { %v1731_v29 = vpop.eup %1730 }
 0x270   :  { %v1604_v14 = vmul.f32 %v1731_v29, %v1596_v22  ;;  %v1605_v33 = vmul.f32 %v1731_v29, %v1597_v21  ;;  %v1606_v46 = vmul.f32 %v1731_v29, %v1598_v34  ;;  %v1607_v35 = vmul.f32 %v1731_v29, %v1599_v27 }
 0x271   :  { %v1608_v37 = vmul.f32 %v1731_v29, %v1600_v31  ;;  %v1609_v45 = vmul.f32 %v1731_v29, %v1601_v56 }
 0x272   :  { %v1616_v17 = vmul.f32 %v1614_v2, %v1604_v14  ;;  %v1617_v43 = vmul.f32 %v1614_v2, %v1605_v33  ;;  %v1618_v47 = vmul.f32 %v1614_v2, %v1606_v46  ;;  %v1619_v52 = vmul.f32 %v1614_v2, %v1607_v35 }
 0x273   :  { %v1620_v49 = vmul.f32 %v1614_v2, %v1608_v37  ;;  %v1621_v25 = vmul.f32 %v1614_v2, %v1609_v45 }
 0x274   :  { %v1628_v51 = vadd.f32 %v1626_v4, %v1616_v17  ;;  %v1629_v41 = vadd.f32 %v1626_v4, %v1617_v43  ;;  %v1630_v58 = vadd.f32 %v1626_v4, %v1618_v47  ;;  %v1631_v55 = vadd.f32 %v1626_v4, %v1619_v52 }
 0x275   :  { %v1632_v57 = vadd.f32 %v1626_v4, %v1620_v49  ;;  %v1633_v59 = vadd.f32 %v1626_v4, %v1621_v25 }
 0x276   :  { %v1634_v20 = vmax.f32 %v1628_v51, 0.0  ;;  %v1635_v53 = vmax.f32 %v1629_v41, 0.0  ;;  %v1636_v9 = vmax.f32 %v1630_v58, 0.0  ;;  %v1637_v26 = vmax.f32 %v1631_v55, 0.0 }
 0x277   :  { %v1638_v24 = vmax.f32 %v1632_v57, 0.0  ;;  %v1639_v48 = vmax.f32 %v1633_v59, 0.0 }
 0x278   :  { %1640 = vst [vmem:[#allocation7] sm:$0xff] %v1634_v20  ;;  %1641 = vst [vmem:[#allocation7 + $0x8] sm:$0xff] %v1635_v53 }
 0x279   :  { %1642 = vst [vmem:[#allocation7 + $0x10] sm:$0xff] %v1636_v9  ;;  %1643 = vst [vmem:[#allocation7 + $0x18] sm:$0xff] %v1637_v26 }
 0x27a   :  { %1644 = vst [vmem:[#allocation7 + $0x20] sm:$0xff] %v1638_v24  ;;  %1645 = vst [vmem:[#allocation7 + $0x28] sm:$0xff] %v1639_v48 }
 0x27b   :  { %1783 = shalt.err (!%p1780_p0)
}
 0x27c   :  { %1655 = dma.vmem_to_hbm [thread:$0]  %s1653_s4, 768, %s2128_s5, [#allocation4]  }
 0x27d   :  { %1796 = dma.done.wait [#allocation4], 768  }
 0x27e   :  { %1797 = vsyncadd [#allocation4], 4294966528 }
 0x27f   :  { %1659 = vsyncpa [#allocation3], 1 }
 0x280   :  { %1660 = vsyncpa [#allocation6], 1 }
 0x281   :  { %1661 = vsyncpa [#allocation4], 1 }

</bundles_post_ra>
